<compile_context>
chip_gen: v7x
topology: tpu7x:2x2x1
jax: 0.10.0
libtpu: 0.0.40
codegen_flags: <defaults>
</compile_context>

<pallas_src>
import numpy as np
import jax
import jax.numpy as jnp
from jax.experimental import pallas as pl
from jax.experimental.pallas import tpu as pltpu


# ----------------------------------------------------------------------------
# Algebra.Quaternions : structure-constant tensor A[i, j, k] such that
#   e_i * e_j = sum_k A[i, j, k] e_k     (basis: 1, i, j, k)
# ----------------------------------------------------------------------------
def quaternion_A():
    A = np.zeros((4, 4, 4), dtype=np.float32)
    table = {
        (0, 0): (+1.0, 0), (0, 1): (+1.0, 1), (0, 2): (+1.0, 2), (0, 3): (+1.0, 3),
        (1, 0): (+1.0, 1), (1, 1): (-1.0, 0), (1, 2): (+1.0, 3), (1, 3): (-1.0, 2),
        (2, 0): (+1.0, 2), (2, 1): (-1.0, 3), (2, 2): (-1.0, 0), (2, 3): (+1.0, 1),
        (3, 0): (+1.0, 3), (3, 1): (+1.0, 2), (3, 2): (-1.0, 1), (3, 3): (-1.0, 0),
    }
    for (i, j), (s, k) in table.items():
        A[i, j, k] = s
    return A


def _round_up(x, m):
    return ((x + m - 1) // m) * m


# ----------------------------------------------------------------------------
# Tile planning (shared between param prep and apply; idempotent on padded dims)
# ----------------------------------------------------------------------------
# Budget for the double-buffered W tile. Conservative so the full plan
# (x + W + bias + out tiles, double-buffered) stays well inside v7x's
# 64 MiB-per-TensorCore VMEM (v5e/v6e have 128 MiB and are trivially fine).
_W_TILE_BUDGET = 24 << 20


def _plan_feature_tiles(K, N, w_itemsize=2, tn_max=512):
    """Returns (K_p, N_p, tk, tn). Calling it again on (K_p, N_p) is a no-op."""
    N_p = _round_up(N, 128)
    tn = 128
    for cand in (512, 384, 256, 128):          # lane multiples; prefer >=256 (v6e/v7x MXU)
        if cand <= tn_max and N_p % cand == 0:
            tn = cand
            break
    K_p = _round_up(K, 128)
    if 2 * K_p * tn * w_itemsize <= _W_TILE_BUDGET:
        # Single K tile: the whole (K_p x tn) W column slab stays VMEM-resident
        # and is never re-streamed across batch tiles; no accumulator needed.
        tk = K_p
    else:
        tk = 128
        for cand in (2048, 1024, 512, 256):
            if 2 * cand * tn * w_itemsize <= _W_TILE_BUDGET:
                tk = cand
                break
        K_p = _round_up(K_p, tk)
    return K_p, N_p, tk, tn


# ----------------------------------------------------------------------------
# Parameter-build-time glue (hoisted OUT of the per-call hot path).
# ----------------------------------------------------------------------------
def make_hyperdense_weight(A, kernel, bias=None, *, compute_dtype=jnp.bfloat16):
    """Build, pad and cast the dense weight/bias ONCE at parameter time.

    Returns:
      W_p : (K_p, N_p) compute_dtype, zero-padded, MXU-ready.
      b_p : (1,  N_p)  float32, zero-padded.
    Matches torch.tensordot(A, kernel, [[1],[0]]).permute(0,2,1,3).reshape(K, N).
    """
    A = jnp.asarray(A, jnp.float32)
    kernel = jnp.asarray(kernel, jnp.float32)
    algebra_dim, input_dim, units = kernel.shape
    K = algebra_dim * input_dim
    N = algebra_dim * units

    W = jnp.einsum("apc,pnu->ancu", A, kernel).reshape(K, N)

    w_itemsize = jnp.dtype(compute_dtype).itemsize
    K_p, N_p, _, _ = _plan_feature_tiles(K, N, w_itemsize)

    W_p = jnp.pad(W, ((0, K_p - K), (0, N_p - N))).astype(compute_dtype)
    b = jnp.zeros((N,), jnp.float32) if bias is None else jnp.asarray(bias, jnp.float32)
    b_p = jnp.pad(b.reshape(1, N), ((0, 0), (0, N_p - N)))
    return W_p, b_p


# ----------------------------------------------------------------------------
# Pallas kernels
# ----------------------------------------------------------------------------
def _hd_kernel_single_k(x_ref, w_ref, b_ref, o_ref):
    # Fast path (K fits one tile): no accumulator scratch, no pl.when.
    # x is streamed in its input dtype and cast to the MXU dtype in VMEM.
    x = x_ref[...].astype(w_ref.dtype)
    acc = jnp.dot(x, w_ref[...], preferred_element_type=jnp.float32)
    o_ref[...] = (acc + b_ref[...]).astype(o_ref.dtype)


def _hd_kernel_k_tiled(x_ref, w_ref, b_ref, o_ref, acc_ref):
    k = pl.program_id(2)
    nk = pl.num_programs(2)

    @pl.when(k == 0)
    def _init():
        # Fold the bias into the accumulator init (no extra epilogue pass).
        acc_ref[...] = jnp.broadcast_to(b_ref[...], acc_ref.shape)

    x = x_ref[...].astype(w_ref.dtype)
    partial = jnp.dot(x, w_ref[...], preferred_element_type=jnp.float32)

    @pl.when(k < nk - 1)
    def _accum():
        acc_ref[...] += partial

    @pl.when(k == nk - 1)
    def _finalize():
        # Fuse the last K step: acc + dot + store (skips one acc RMW pass).
        o_ref[...] = (acc_ref[...] + partial).astype(o_ref.dtype)


# ----------------------------------------------------------------------------
# Hot path: out = x @ W + bias on the MXU.
# ----------------------------------------------------------------------------
def hyperdense_apply(x, W_p, b_p, *, n_out=None, out_dtype=jnp.float32, tm_max=512):
    """x: (B, K) float. W_p/b_p: prebuilt via make_hyperdense_weight."""
    B, K = x.shape
    K_p, N_p = W_p.shape
    if n_out is None:
        n_out = N_p

    w_itemsize = jnp.dtype(W_p.dtype).itemsize
    _, _, tk, tn = _plan_feature_tiles(K_p, N_p, w_itemsize)

    tm = min(tm_max, _round_up(max(B, 8), 8))
    B_p = _round_up(B, tm)

    # v7x has 2 TensorCores: make sure the parallel grid exposes >= 2 tiles.
    if (N_p // tn) * (B_p // tm) < 2:
        if tn >= 256:
            tn //= 2
        elif tm >= 16 and B > tm // 2:
            tm //= 2
            B_p = _round_up(B, tm)

    x_p = x
    if (B_p, K_p) != (B, K):
        x_p = jnp.pad(x_p, ((0, B_p - B), (0, K_p - K)))

    n_tiles, b_tiles, k_tiles = N_p // tn, B_p // tm, K_p // tk
    x_itemsize = jnp.dtype(x_p.dtype).itemsize
    out_itemsize = jnp.dtype(out_dtype).itemsize

    x_bytes = B_p * K_p * x_itemsize
    w_bytes = K_p * N_p * w_itemsize
    out_bytes = B_p * N_p * out_itemsize

    vmem_need = (2 * tm * tk * x_itemsize          # x tiles (double-buffered)
                 + 2 * tk * tn * w_itemsize        # W tiles
                 + 2 * tn * 4                      # bias tiles
                 + 2 * tm * tn * out_itemsize      # out tiles
                 + (tm * tn * 4 if k_tiles > 1 else 0))   # f32 accumulator
    vmem_limit = int(min(max(vmem_need * 3 // 2 + (1 << 20), 32 << 20), 60 << 20))

    flops = 2 * B_p * K_p * N_p

    if k_tiles == 1:
        # Grid (N-tiles, B-tiles): W block index (0, j) is constant across the
        # batch axis -> each W column slab is DMA'd exactly once.
        cost = pl.CostEstimate(
            flops=flops, transcendentals=0,
            bytes_accessed=x_bytes * n_tiles + w_bytes + b_p.size * 4 + out_bytes)
        out = pl.pallas_call(
            _hd_kernel_single_k,
            out_shape=jax.ShapeDtypeStruct((B_p, N_p), out_dtype),
            grid_spec=pltpu.PrefetchScalarGridSpec(
                num_scalar_prefetch=0,
                grid=(n_tiles, b_tiles),
                in_specs=[
                    pl.BlockSpec((tm, tk), lambda j, i: (i, 0)),   # x tile
                    pl.BlockSpec((tk, tn), lambda j, i: (0, j)),   # W slab (resident)
                    pl.BlockSpec((1, tn), lambda j, i: (0, j)),    # bias (f32)
                ],
                out_specs=pl.BlockSpec((tm, tn), lambda j, i: (i, j)),
            ),
            compiler_params=pltpu.CompilerParams(
                dimension_semantics=("parallel", "parallel"),
                vmem_limit_bytes=vmem_limit),
            cost_estimate=cost,
        )(x_p, W_p, b_p)
    else:
        cost = pl.CostEstimate(
            flops=flops, transcendentals=0,
            bytes_accessed=(x_bytes * n_tiles + w_bytes * b_tiles
                            + b_p.size * 4 + out_bytes))
        out = pl.pallas_call(
            _hd_kernel_k_tiled,
            out_shape=jax.ShapeDtypeStruct((B_p, N_p), out_dtype),
            grid_spec=pltpu.PrefetchScalarGridSpec(
                num_scalar_prefetch=0,
                grid=(n_tiles, b_tiles, k_tiles),
                in_specs=[
                    pl.BlockSpec((tm, tk), lambda j, i, k: (i, k)),   # x tile
                    pl.BlockSpec((tk, tn), lambda j, i, k: (k, j)),   # W tile
                    pl.BlockSpec((1, tn), lambda j, i, k: (0, j)),    # bias (f32)
                ],
                out_specs=pl.BlockSpec((tm, tn), lambda j, i, k: (i, j)),
                scratch_shapes=[pltpu.VMEM((tm, tn), jnp.float32)],
            ),
            compiler_params=pltpu.CompilerParams(
                dimension_semantics=("parallel", "parallel", "arbitrary"),
                vmem_limit_bytes=vmem_limit),
            cost_estimate=cost,
        )(x_p, W_p, b_p)

    if (B_p, N_p) != (B, n_out):
        out = out[:B, :n_out]
    # activation = None (module default) -> no-op.
    return out


def hyperdense_forward(x, A, kernel, bias=None, activation=None):
    """Convenience wrapper matching the PyTorch forward (rebuilds W per call).
    Prefer make_hyperdense_weight + hyperdense_apply in training/serving loops."""
    algebra_dim, _, units = kernel.shape
    N = algebra_dim * units
    W_p, b_p = make_hyperdense_weight(A, kernel, bias)
    out = hyperdense_apply(x, W_p, b_p, n_out=N)
    if activation is not None:
        out = activation(out)
    return out


# ----------------------------------------------------------------------------
# Deterministic parameter init (mirrors nn.init.xavier_uniform_ / zeros_)
# ----------------------------------------------------------------------------
def init_params(key, algebra_dim, input_dim, units):
    fan_in = input_dim * units
    fan_out = algebra_dim * units
    bound = float(np.sqrt(6.0 / (fan_in + fan_out)))
    kernel = jax.random.uniform(
        key, (algebra_dim, input_dim, units), jnp.float32, -bound, bound
    )
    bias = jnp.zeros((algebra_dim * units,), jnp.float32)
    return kernel, bias


if __name__ == "__main__":
    algebra_dim = 4          # quaternions
    input_dim = 32           # per-component input features
    units = 32               # per-component output units
    batch = 8

    A = jnp.asarray(quaternion_A())

    key = jax.random.PRNGKey(0)
    kx, kw = jax.random.split(key)
    x = jax.random.normal(kx, (batch, algebra_dim * input_dim), jnp.float32)
    kernel, bias = init_params(kw, algebra_dim, input_dim, units)

    N = algebra_dim * units
    # Build (and pad/cast) W ONCE at parameter time; per-call path is one pallas_call.
    W_p, b_p = make_hyperdense_weight(A, kernel, bias)

    fwd = jax.jit(hyperdense_apply, static_argnames=("n_out",))
    out = jax.block_until_ready(fwd(x, W_p, b_p, n_out=N))

    # pure-JAX f32 reference of the PyTorch forward
    W_ref = jnp.einsum("apc,pnu->ancu", A, kernel).reshape(
        algebra_dim * input_dim, N
    )
    ref = x @ W_ref + bias
    # bf16 MXU weights -> loosened tolerance vs. the f32 reference
    np.testing.assert_allclose(np.asarray(out), np.asarray(ref), rtol=2e-2, atol=2e-2)

    print("KERNEL_OK")
</pallas_src>

<mosaic_0001>
module attributes {stable_mosaic.version = 11 : i64} {
  func.func @_hd_kernel_single_k(%arg0: i32, %arg1: i32, %arg2: memref<8x128xf32, #tpu.memory_space<vmem>>, %arg3: memref<128x128xbf16, #tpu.memory_space<vmem>>, %arg4: memref<1x128xf32, #tpu.memory_space<vmem>>, %arg5: memref<8x128xf32, #tpu.memory_space<vmem>>) attributes {dimension_semantics = [#tpu.dimension_semantics<parallel>, #tpu.dimension_semantics<parallel>], iteration_bounds = array<i64: 1, 1>, scalar_prefetch = 0 : i64, scratch_operands = 0 : i64, tpu.core_type = #tpu.core_type<tc>, window_params = [{transform_indices = @transform_0, window_bounds = array<i64: 8, 128>}, {transform_indices = @transform_1, window_bounds = array<i64: 128, 128>}, {transform_indices = @transform_2, window_bounds = array<i64: 1, 128>}, {transform_indices = @transform_3, window_bounds = array<i64: 8, 128>}]} {
    %c0 = arith.constant 0 : index
    %c0_0 = arith.constant 0 : index
    %0 = vector.load %arg2[%c0, %c0_0] : memref<8x128xf32, #tpu.memory_space<vmem>>, vector<8x128xf32>
    %1 = arith.truncf %0 : vector<8x128xf32> to vector<8x128xbf16>
    %c0_1 = arith.constant 0 : index
    %c0_2 = arith.constant 0 : index
    %2 = vector.load %arg3[%c0_1, %c0_2] : memref<128x128xbf16, #tpu.memory_space<vmem>>, vector<128x128xbf16>
    %cst = arith.constant dense<0.000000e+00> : vector<8x128xf32>
    %3 = tpu.matmul %1, %2, %cst {dimension_numbers = #tpu.dot_dimension_numbers<[1], [0], [0], [1], [0, 0, 1, 1], [], []>} : vector<8x128xbf16>, vector<128x128xbf16>, vector<8x128xf32> -> vector<8x128xf32>
    %c0_3 = arith.constant 0 : index
    %c0_4 = arith.constant 0 : index
    %4 = vector.load %arg4[%c0_3, %c0_4] : memref<1x128xf32, #tpu.memory_space<vmem>>, vector<1x128xf32>
    %5 = vector.broadcast %4 : vector<1x128xf32> to vector<8x128xf32>
    %6 = arith.addf %3, %5 : vector<8x128xf32>
    %c0_5 = arith.constant 0 : index
    %c0_6 = arith.constant 0 : index
    %7 = vector.load %arg5[%c0_5, %c0_6] : memref<8x128xf32, #tpu.memory_space<vmem>>, vector<8x128xf32>
    tpu.vector_store %arg5[%c0_5, %c0_6], %6 {strides = array<i32>} : memref<8x128xf32, #tpu.memory_space<vmem>>, vector<8x128xf32>,
    return
  }
  func.func @transform_0(%arg0: i32, %arg1: i32) -> (i32, i32) {
    %c0_i32 = arith.constant 0 : i32
    %c0_i32_0 = arith.constant 0 : i32
    return %arg1, %c0_i32 : i32, i32
  }
  func.func @transform_1(%arg0: i32, %arg1: i32) -> (i32, i32) {
    %c0_i32 = arith.constant 0 : i32
    %c0_i32_0 = arith.constant 0 : i32
    return %c0_i32, %arg0 : i32, i32
  }
  func.func @transform_2(%arg0: i32, %arg1: i32) -> (i32, i32) {
    %c0_i32 = arith.constant 0 : i32
    %c0_i32_0 = arith.constant 0 : i32
    return %c0_i32, %arg0 : i32, i32
  }
  func.func @transform_3(%arg0: i32, %arg1: i32) -> (i32, i32) {
    %c0_i32 = arith.constant 0 : i32
    return %arg1, %arg0 : i32, i32
  }
}

</mosaic_0001>

<bundles_post_ra>
// kernel: hyperdense_apply.1
= control target key start
LH: loop header
LB: loop body
LE: loop exit
PB: predicated region body
PF: predicated region fallthrough
CT: control target
= control target key end

     0   :  { %8 = vsyncpa [#allocation3], 0  ;;  %s370_s0 = inlined_call_operand.hbm [shape: f32[8,128], index: 0, kind: input, shape index: {}]   ;;  %s371_s1 = inlined_call_operand.hbm [shape: bf16[128,128], index: 1, kind: input, shape index: {}]   ;;  %s372_s2 = inlined_call_operand.vmem [shape: f32[1,128], index: 2, kind: input, shape index: {}]   ;;  %s373_s3 = inlined_call_operand.hbm [shape: f32[8,128], index: 3, kind: output, shape index: {}]  }
   0x1   :  { %9 = vsyncpa [#allocation6], 0 }
   0x2   :  { %10 = vsyncpa [#allocation4], 0  ;;  %s297_s12 = smov [#allocation2]   ;;  %s298_s14 = smov [#allocation5]  }
   0x3   :  { %s17_s13 = sshll.u32 %s297_s12, 4  ;;  %s26_s15 = sshll.u32 %s298_s14, 4  ;;  %s18_s13 = int_to_ptr.vmem [resolvable:$true] %s17_s13  ;;  %s324_s15 = int_to_ptr.vmem [resolvable:$true] %s26_s15 }
   0x4   :  { %s225_s18 = scalar_lea.hbm %s370_s0, 128 }
   0x5   :  { %p226_p0 = scmp.ne.s32.totalorder %s370_s0, %s225_s18  ;;  %p229_p1 = scmp.lt.u32.totalorder %s225_s18, %s370_s0 }
   0x7   :  { %p231_p2 = pnand %p229_p1, %p226_p0 }
   0x9   :  { %234 = shalt.err (!%p231_p2)
}
   0xa   :  { %s235_s23 = scalar_lea.vmem %s18_s13, 128  ;;  %p240_p4 = scmp.lt.s32.totalorder %s18_s13, %s18_s13 }
   0xb   :  { %p236_p3 = scmp.ne.s32.totalorder %s18_s13, %s235_s23  ;;  %p241_p5 = scmp.lt.s32.totalorder %s235_s23, %s235_s23 }
   0xd   :  { %p242_p6 = por %p241_p5, %p240_p4 }
   0xf   :  { %p243_p7 = pnand %p242_p6, %p236_p3 }
  0x11   :  { %246 = shalt.err (!%p243_p7)
}
  0x12   :  { %20 = dma.hbm_to_vmem [thread:$0]  %s370_s0, 128, %s18_s13, [#allocation3]  }
  0x13   :  { %s247_s28 = scalar_lea.hbm %s371_s1, 1024 }
  0x14   :  { %p248_p8 = scmp.ne.s32.totalorder %s371_s1, %s247_s28  ;;  %p251_p9 = scmp.lt.u32.totalorder %s247_s28, %s371_s1 }
  0x16   :  { %p253_p10 = pnand %p251_p9, %p248_p8 }
  0x18   :  { %256 = shalt.err (!%p253_p10)
}
  0x19   :  { %s257_s6 = scalar_lea.vmem %s324_s15, 1024  ;;  %p262_p12 = scmp.lt.s32.totalorder %s324_s15, %s324_s15 }
  0x1a   :  { %p258_p11 = scmp.ne.s32.totalorder %s324_s15, %s257_s6  ;;  %p263_p13 = scmp.lt.s32.totalorder %s257_s6, %s257_s6 }
  0x1c   :  { %p264_p0 = por %p263_p13, %p262_p12 }
  0x1e   :  { %p265_p1 = pnand %p264_p0, %p258_p11 }
  0x20   :  { %268 = shalt.err (!%p265_p1)
}
  0x21   :  { %s299_s0 = smov 64   ;;  %s300_s7 = smov 4  }
  0x22   :  { %32 = dma.hbm_to_vmem [thread:$0]  %s371_s1, 1024, %s324_s15, [#allocation6], %s299_s0, %s299_s0, %s300_s7  }
  0x23   :  { %291 = dma.done.wait [#allocation3], 128  }
  0x24   :  { %292 = vsyncadd [#allocation3], 4294967168 }
  0x25   :  { %293 = dma.done.wait [#allocation6], 1024  }
  0x26   :  { %294 = vsyncadd [#allocation6], 4294966272  ;;  %v301_v0 = vmov 0.0   ;;  %vm302_vm0 = vmmov 0   ;;  %v217_v1 = vld [vmem:[#allocation5] sm:$0xff]   ;;  %v218_v2 = vld [vmem:[#allocation5 + $0x8] sm:$0xff]  }
  0x27   :  { %190 = vmatprep.subr.bf16.mxu0 %v301_v0  ;;  %206 = vmatprep.mubr.msk.bf16.mxu0 %vm302_vm0, %v301_v0  ;;  %v219_v3 = vld [vmem:[#allocation5 + $0x10] sm:$0xff]   ;;  %v220_v4 = vld [vmem:[#allocation5 + $0x18] sm:$0xff]   ;;  %v221_v5 = vld [vmem:[#allocation5 + $0x20] sm:$0xff]   ;;  %s303_s11 = smov [#allocation7]  }
  0x28   :  { %191 = vmatpush3.bf16.msra.mxu0 %v217_v1  ;;  %v222_v6 = vld [vmem:[#allocation5 + $0x28] sm:$0xff]   ;;  %v223_v7 = vld [vmem:[#allocation5 + $0x30] sm:$0xff]   ;;  %v224_v8 = vld [vmem:[#allocation5 + $0x38] sm:$0xff]   ;;  %s162_s12 = sshll.u32 %s303_s11, 4  ;;  %s163_s12 = int_to_ptr.vmem [resolvable:$true] %s162_s12 }
  0x29   :  { %192 = vmatprep.subr.bf16.mxu0 %v301_v0  ;;  %v42_v9 = vld [vmem:[#allocation2] sm:$0xff]  ;;  %s269_s13 = scalar_lea.vmem %s163_s12, 128  ;;  %p274_p3 = scmp.lt.s32.totalorder %s163_s12, %s163_s12 }
  0x2a   :  { %v43_v10 = vpack.c.bf16 %v42_v9, %v42_v9  ;;  %v172_v11 = vld [vmem:[%s372_s2] ss:$0 sm:$0xff]  ;;  %p270_p2 = scmp.ne.s32.totalorder %s163_s12, %s269_s13  ;;  %p275_p4 = scmp.lt.s32.totalorder %s269_s13, %s269_s13 }
  0x2c   :  { %193 = vmatpush3.bf16.msra.mxu0 %v218_v2  ;;  %p276_p5 = por %p275_p4, %p274_p3 }
  0x2d   :  { %194 = vmatprep.subr.bf16.mxu0 %v301_v0 }
  0x2e   :  { %p277_p6 = pnand %p276_p5, %p270_p2 }
  0x30   :  { %195 = vmatpush3.bf16.msra.mxu0 %v219_v3 }
  0x31   :  { %196 = vmatprep.subr.bf16.mxu0 %v301_v0 }
  0x34   :  { %197 = vmatpush3.bf16.msra.mxu0 %v220_v4 }
  0x35   :  { %198 = vmatprep.subr.bf16.mxu0 %v301_v0 }
  0x38   :  { %199 = vmatpush3.bf16.msra.mxu0 %v221_v5 }
  0x39   :  { %200 = vmatprep.subr.bf16.mxu0 %v301_v0 }
  0x3c   :  { %201 = vmatpush3.bf16.msra.mxu0 %v222_v6 }
  0x3d   :  { %202 = vmatprep.subr.bf16.mxu0 %v301_v0 }
  0x40   :  { %203 = vmatpush3.bf16.msra.mxu0 %v223_v7 }
  0x41   :  { %204 = vmatprep.subr.bf16.mxu0 %v301_v0 }
  0x44   :  { %205 = vmatpush3.bf16.msra.mxu0 %v224_v8 }
  0x47   :  { %207 = vmatmul.mubr.bf16.vlgmr.msra.gmra.mrb[0].mxu0 %v43_v10 }
 0x11a   :  { %v149_v12 = vpop.f32.mrb[0].mxu0 }
 0x11b   :  { %v150_v13 = vadd.f32 %v172_v11, %v149_v12  ;;  %v208_v14 = vpop.f32.mrb[1].mxu0 }
 0x11c   :  { %v152_v15 = vpop.f32.mrb[2].mxu0 }
 0x11d   :  { %155 = vst [vmem:[#allocation7] sm:$0xff] %v150_v13  ;;  %v209_v16 = vpop.f32.mrb[3].mxu0 }
 0x11e   :  { %280 = shalt.err (!%p277_p6)
}
 0x11f   :  { %s281_s2 = scalar_lea.hbm %s373_s3, 128 }
 0x120   :  { %p282_p7 = scmp.ne.s32.totalorder %s373_s3, %s281_s2  ;;  %p285_p8 = scmp.lt.u32.totalorder %s281_s2, %s373_s3 }
 0x122   :  { %p287_p9 = pnand %p285_p8, %p282_p7 }
 0x124   :  { %290 = shalt.err (!%p287_p9)
}
 0x125   :  { %165 = dma.vmem_to_hbm [thread:$0]  %s163_s12, 128, %s373_s3, [#allocation4]  }
 0x126   :  { %295 = dma.done.wait [#allocation4], 128  }
 0x127   :  { %296 = vsyncadd [#allocation4], 4294967168 }
 0x128   :  { %169 = vsyncpa [#allocation3], 1 }
 0x129   :  { %170 = vsyncpa [#allocation6], 1 }
 0x12a   :  { %171 = vsyncpa [#allocation4], 1 }

</bundles_post_ra>
